<compile_context>
chip_gen: v6e
topology: v6e:2x2x1
jax: 0.10.0
libtpu: 0.0.40
codegen_flags: <defaults>
</compile_context>

<pallas_src>
import jax
import jax.numpy as jnp
from jax import lax
from jax.experimental import pallas as pl
from jax.experimental.pallas import tpu as pltpu

BN_EPS = 1e-5
NORM_EPS = 1e-12
LANE = 128


def projection_kernel(x_ref, w1_ref, gamma_ref, beta_ref, w2_ref, o_ref):
    # ---- Linear 1 (bias omitted: cancelled exactly by training-mode BN) ----
    x = x_ref[...]                                              # (B, Din_p) f32
    w1 = w1_ref[...]                                            # (Din_p, Dh_p) f32
    h = jnp.dot(x, w1, preferred_element_type=jnp.float32)      # (B, Dh_p)

    # ---- BatchNorm1d (training-mode), one-pass stats, folded scale/shift ----
    inv_b = 1.0 / h.shape[0]
    s = jnp.sum(h, axis=0, keepdims=True)                       # (1, Dh_p)
    ssq = jnp.sum(h * h, axis=0, keepdims=True)                 # (1, Dh_p)
    mean = s * inv_b
    var = jnp.maximum(ssq * inv_b - mean * mean, 0.0)           # biased batch var
    inv_std = lax.rsqrt(var + BN_EPS)                           # EUP

    scale = gamma_ref[...] * inv_std                            # (1, Dh_p)
    shift = beta_ref[...] - mean * scale                        # (1, Dh_p)

    # ---- BN apply + ReLU (2 VPU ops + max over the (B, Dh_p) tile) ----
    r = jnp.maximum(h * scale + shift, 0.0)

    # ---- Linear 2 (no bias) ----
    y = jnp.dot(r, w2_ref[...], preferred_element_type=jnp.float32)  # (B, Dout_p)

    # ---- F.normalize(dim=1): y / max(||y||, 1e-12) == y * rsqrt(max(||y||^2, 1e-24)) ----
    sq = jnp.sum(y * y, axis=1, keepdims=True)                  # (B, 1)
    inv_norm = lax.rsqrt(jnp.maximum(sq, NORM_EPS * NORM_EPS))  # EUP, exact
    o_ref[...] = (y * inv_norm).astype(o_ref.dtype)


def _pad_to(a, target, axis):
    pad = target - a.shape[axis]
    if pad <= 0:
        return a
    widths = [(0, 0)] * a.ndim
    widths[axis] = (0, pad)
    return jnp.pad(a, widths)


def _round_up(n, m):
    return ((n + m - 1) // m) * m


def projection_forward(x, w1, b1, gamma, beta, w2):
    """Forward pass of the Projection module.

    x:     (B, D_in)            input
    w1:    (D_hid, D_in)        torch Linear-1 weight (bias b1 accepted but unused:
                                 training-mode BN cancels it exactly)
    gamma: (D_hid,)             BatchNorm1d weight
    beta:  (D_hid,)             BatchNorm1d bias
    w2:    (D_out, D_hid)       torch Linear-2 weight (bias=False)
    """
    del b1  # mathematically a no-op under training-mode BatchNorm

    B, D_in = x.shape
    D_hid = w1.shape[0]
    D_out = w2.shape[0]

    # Lane-pad feature dims to multiples of 128 for lane-dense vregs / MXU feeds.
    d_in_p = _round_up(D_in, LANE)
    d_hid_p = _round_up(D_hid, LANE)
    d_out_p = _round_up(D_out, LANE)

    f32 = jnp.float32
    x_p = _pad_to(x.astype(f32), d_in_p, 1)
    w1_t = _pad_to(_pad_to(w1.T.astype(f32), d_in_p, 0), d_hid_p, 1)   # (Din_p, Dh_p)
    w2_t = _pad_to(_pad_to(w2.T.astype(f32), d_hid_p, 0), d_out_p, 1)  # (Dh_p, Dout_p)
    gamma_p = _pad_to(gamma.astype(f32).reshape(1, D_hid), d_hid_p, 1)  # padded gammas are 0
    beta_p = _pad_to(beta.astype(f32).reshape(1, D_hid), d_hid_p, 1)    # padded betas are 0
    # Padded hidden features: h==0, gamma==0, beta==0 -> scale==0, shift==0 -> contribute 0.

    vmem = pl.BlockSpec(memory_space=pltpu.MemorySpace.VMEM)

    out_p = pl.pallas_call(
        projection_kernel,
        out_shape=jax.ShapeDtypeStruct((B, d_out_p), f32),
        in_specs=[vmem, vmem, vmem, vmem, vmem],
        out_specs=vmem,
    )(x_p, w1_t, gamma_p, beta_p, w2_t)

    return out_p[:, :D_out]


def _reference(x, w1, b1, gamma, beta, w2):
    """Pure-JAX reference with full PyTorch semantics (bias included)."""
    h = x @ w1.T + b1
    mean = jnp.mean(h, axis=0, keepdims=True)
    var = jnp.mean((h - mean) ** 2, axis=0, keepdims=True)
    h = (h - mean) / jnp.sqrt(var + BN_EPS) * gamma + beta
    r = jnp.maximum(h, 0.0)
    y = r @ w2.T
    n = jnp.sqrt(jnp.sum(y * y, axis=1, keepdims=True))
    return y / jnp.maximum(n, NORM_EPS)


if __name__ == "__main__":
    # Small shapes consistent with the module (input_dim -> hidden_dim -> output_dim).
    B, D_in, D_hid, D_out = 8, 32, 64, 128

    key = jax.random.PRNGKey(0)
    kx, kw1, kb1, kw2 = jax.random.split(key, 4)

    x = jax.random.normal(kx, (B, D_in), dtype=jnp.float32)

    # Deterministic PyTorch-style uniform init for the Linear layers (torch layout: (out, in)).
    bound1 = 1.0 / (D_in ** 0.5)
    w1 = jax.random.uniform(kw1, (D_hid, D_in), minval=-bound1, maxval=bound1, dtype=jnp.float32)
    b1 = jax.random.uniform(kb1, (D_hid,), minval=-bound1, maxval=bound1, dtype=jnp.float32)
    bound2 = 1.0 / (D_hid ** 0.5)
    w2 = jax.random.uniform(kw2, (D_out, D_hid), minval=-bound2, maxval=bound2, dtype=jnp.float32)

    # BatchNorm1d params: gamma=1, beta=0 (PyTorch default init).
    gamma = jnp.ones((D_hid,), dtype=jnp.float32)
    beta = jnp.zeros((D_hid,), dtype=jnp.float32)

    out = projection_forward(x, w1, b1, gamma, beta, w2)
    out = jax.block_until_ready(out)

    ref = _reference(x, w1, b1, gamma, beta, w2)
    assert out.shape == (B, D_out)
    assert jnp.allclose(out, ref, atol=1e-5, rtol=1e-5), "mismatch vs JAX reference"

    print("KERNEL_OK")
</pallas_src>

<mosaic_0001>
module attributes {stable_mosaic.version = 11 : i64} {
  func.func @projection_kernel(%arg0: memref<8x128xf32, #tpu.memory_space<vmem>>, %arg1: memref<128x128xf32, #tpu.memory_space<vmem>>, %arg2: memref<1x128xf32, #tpu.memory_space<vmem>>, %arg3: memref<1x128xf32, #tpu.memory_space<vmem>>, %arg4: memref<128x128xf32, #tpu.memory_space<vmem>>, %arg5: memref<8x128xf32, #tpu.memory_space<vmem>>) attributes {dimension_semantics = [], scalar_prefetch = 0 : i64, scratch_operands = 0 : i64, tpu.core_type = #tpu.core_type<tc>} {
    %c0 = arith.constant 0 : index
    %c0_0 = arith.constant 0 : index
    %0 = vector.load %arg0[%c0, %c0_0] : memref<8x128xf32, #tpu.memory_space<vmem>>, vector<8x128xf32>
    %c0_1 = arith.constant 0 : index
    %c0_2 = arith.constant 0 : index
    %1 = vector.load %arg1[%c0_1, %c0_2] : memref<128x128xf32, #tpu.memory_space<vmem>>, vector<128x128xf32>
    %cst = arith.constant dense<0.000000e+00> : vector<8x128xf32>
    %2 = tpu.matmul %0, %1, %cst {dimension_numbers = #tpu.dot_dimension_numbers<[1], [0], [0], [1], [0, 0, 1, 1], [], []>} : vector<8x128xf32>, vector<128x128xf32>, vector<8x128xf32> -> vector<8x128xf32>
    %cst_3 = arith.constant dense<0.000000e+00> : vector<128xf32>
    %3 = vector.multi_reduction <add>, %2, %cst_3 [0] : vector<8x128xf32> to vector<128xf32>
    %4 = vector.shape_cast %3 : vector<128xf32> to vector<1x128xf32>
    %5 = arith.mulf %2, %2 : vector<8x128xf32>
    %cst_4 = arith.constant dense<0.000000e+00> : vector<128xf32>
    %6 = vector.multi_reduction <add>, %5, %cst_4 [0] : vector<8x128xf32> to vector<128xf32>
    %7 = vector.shape_cast %6 : vector<128xf32> to vector<1x128xf32>
    %cst_5 = arith.constant 1.250000e-01 : f32
    %8 = vector.broadcast %cst_5 : f32 to vector<1x128xf32>
    %9 = arith.mulf %4, %8 : vector<1x128xf32>
    %cst_6 = arith.constant 1.250000e-01 : f32
    %10 = vector.broadcast %cst_6 : f32 to vector<1x128xf32>
    %11 = arith.mulf %7, %10 : vector<1x128xf32>
    %12 = arith.mulf %9, %9 : vector<1x128xf32>
    %13 = arith.subf %11, %12 : vector<1x128xf32>
    %cst_7 = arith.constant 0.000000e+00 : f32
    %14 = vector.broadcast %cst_7 : f32 to vector<1x128xf32>
    %15 = arith.maximumf %13, %14 : vector<1x128xf32>
    %cst_8 = arith.constant 9.99999974E-6 : f32
    %16 = vector.broadcast %cst_8 : f32 to vector<1x128xf32>
    %17 = arith.addf %15, %16 : vector<1x128xf32>
    %18 = math.rsqrt %17 : vector<1x128xf32>
    %c0_9 = arith.constant 0 : index
    %c0_10 = arith.constant 0 : index
    %19 = vector.load %arg2[%c0_9, %c0_10] : memref<1x128xf32, #tpu.memory_space<vmem>>, vector<1x128xf32>
    %20 = arith.mulf %19, %18 : vector<1x128xf32>
    %c0_11 = arith.constant 0 : index
    %c0_12 = arith.constant 0 : index
    %21 = vector.load %arg3[%c0_11, %c0_12] : memref<1x128xf32, #tpu.memory_space<vmem>>, vector<1x128xf32>
    %22 = arith.mulf %9, %20 : vector<1x128xf32>
    %23 = arith.subf %21, %22 : vector<1x128xf32>
    %24 = vector.broadcast %20 : vector<1x128xf32> to vector<8x128xf32>
    %25 = arith.mulf %2, %24 : vector<8x128xf32>
    %26 = vector.broadcast %23 : vector<1x128xf32> to vector<8x128xf32>
    %27 = arith.addf %25, %26 : vector<8x128xf32>
    %cst_13 = arith.constant 0.000000e+00 : f32
    %28 = vector.broadcast %cst_13 : f32 to vector<8x128xf32>
    %29 = arith.maximumf %27, %28 : vector<8x128xf32>
    %c0_14 = arith.constant 0 : index
    %c0_15 = arith.constant 0 : index
    %30 = vector.load %arg4[%c0_14, %c0_15] : memref<128x128xf32, #tpu.memory_space<vmem>>, vector<128x128xf32>
    %cst_16 = arith.constant dense<0.000000e+00> : vector<8x128xf32>
    %31 = tpu.matmul %29, %30, %cst_16 {dimension_numbers = #tpu.dot_dimension_numbers<[1], [0], [0], [1], [0, 0, 1, 1], [], []>} : vector<8x128xf32>, vector<128x128xf32>, vector<8x128xf32> -> vector<8x128xf32>
    %32 = arith.mulf %31, %31 : vector<8x128xf32>
    %cst_17 = arith.constant dense<0.000000e+00> : vector<8xf32>
    %33 = vector.multi_reduction <add>, %32, %cst_17 [1] : vector<8x128xf32> to vector<8xf32>
    %34 = vector.shape_cast %33 : vector<8xf32> to vector<8x1xf32>
    %cst_18 = arith.constant 1.000000e-24 : f32
    %35 = vector.broadcast %cst_18 : f32 to vector<8x1xf32>
    %36 = arith.maximumf %34, %35 : vector<8x1xf32>
    %37 = math.rsqrt %36 : vector<8x1xf32>
    %38 = vector.broadcast %37 : vector<8x1xf32> to vector<8x128xf32>
    %39 = arith.mulf %31, %38 : vector<8x128xf32>
    %c0_19 = arith.constant 0 : index
    %c0_20 = arith.constant 0 : index
    %40 = vector.load %arg5[%c0_19, %c0_20] : memref<8x128xf32, #tpu.memory_space<vmem>>, vector<8x128xf32>
    tpu.vector_store %arg5[%c0_19, %c0_20], %39 {strides = array<i32>} : memref<8x128xf32, #tpu.memory_space<vmem>>, vector<8x128xf32>,
    return
  }
}

</mosaic_0001>

<bundles_post_ra>
// kernel: tpu_custom_call.1
= control target key start
LH: loop header
LB: loop body
LE: loop exit
PB: predicated region body
PF: predicated region fallthrough
CT: control target
= control target key end

     0   :  { %10 = vsyncpa [#allocation3], 0  ;;  %s588_s0 = inlined_call_operand.hbm [shape: f32[8,128], index: 0, kind: input, shape index: {}]   ;;  %s589_s1 = inlined_call_operand.hbm [shape: f32[128,128], index: 1, kind: input, shape index: {}]   ;;  %s590_s2 = inlined_call_operand.vmem [shape: f32[1,128], index: 2, kind: input, shape index: {}]   ;;  %s591_s3 = inlined_call_operand.vmem [shape: f32[1,128], index: 3, kind: input, shape index: {}]   ;;  %s592_s4 = inlined_call_operand.hbm [shape: f32[128,128], index: 4, kind: input, shape index: {}]   ;;  %s593_s5 = inlined_call_operand.hbm [shape: f32[8,128], index: 5, kind: output, shape index: {}]  }
   0x1   :  { %11 = vsyncpa [#allocation6], 0 }
   0x2   :  { %12 = vsyncpa [#allocation4], 0  ;;  %s498_s18 = smov [#allocation5]  }
   0x3   :  { %s28_s19 = sshll.u32 %s498_s18, 4  ;;  %s29_s19 = int_to_ptr.vmem [resolvable:$true] %s28_s19 }
   0x4   :  { %s420_s20 = scalar_lea.vmem %s29_s19, 2048  ;;  %p425_p1 = scmp.lt.s32.totalorder %s29_s19, %s29_s19 }
   0x5   :  { %p421_p0 = scmp.ne.s32.totalorder %s29_s19, %s420_s20  ;;  %p426_p2 = scmp.lt.s32.totalorder %s420_s20, %s420_s20 }
   0x7   :  { %p427_p3 = por %p426_p2, %p425_p1 }
   0x9   :  { %p428_p4 = pnand %p427_p3, %p421_p0 }
   0xb   :  { %431 = shalt.err (!%p428_p4)
}
   0xc   :  { %s499_s21 = smov 128   ;;  %s500_s22 = smov 8  }
   0xd   :  { %34 = dma.hbm_to_vmem [thread:$0]  %s589_s1, 2048, %s29_s19, [#allocation6], %s499_s21, %s499_s21, %s500_s22  }
   0xe   :  { %s501_s25 = smov [#allocation2]   ;;  %s502_s27 = smov [#allocation7]  }
   0xf   :  { %s19_s26 = sshll.u32 %s501_s25, 4  ;;  %s44_s28 = sshll.u32 %s502_s27, 4  ;;  %s20_s26 = int_to_ptr.vmem [resolvable:$true] %s19_s26  ;;  %s45_s28 = int_to_ptr.vmem [resolvable:$true] %s44_s28 }
  0x10   :  { %s440_s29 = scalar_lea.vmem %s20_s26, 128  ;;  %p445_p6 = scmp.lt.s32.totalorder %s20_s26, %s20_s26 }
  0x11   :  { %p441_p5 = scmp.ne.s32.totalorder %s20_s26, %s440_s29  ;;  %p446_p7 = scmp.lt.s32.totalorder %s440_s29, %s440_s29 }
  0x13   :  { %p447_p8 = por %p446_p7, %p445_p6 }
  0x15   :  { %p448_p9 = pnand %p447_p8, %p441_p5 }
  0x17   :  { %451 = shalt.err (!%p448_p9)
}
  0x18   :  { %22 = dma.hbm_to_vmem [thread:$0]  %s588_s0, 128, %s20_s26, [#allocation3]  }
  0x19   :  { %s460_s7 = scalar_lea.vmem %s45_s28, 2048  ;;  %p465_p11 = scmp.lt.s32.totalorder %s45_s28, %s45_s28 }
  0x1a   :  { %p461_p10 = scmp.ne.s32.totalorder %s45_s28, %s460_s7  ;;  %p466_p12 = scmp.lt.s32.totalorder %s460_s7, %s460_s7 }
  0x1c   :  { %p467_p13 = por %p466_p12, %p465_p11 }
  0x1e   :  { %p468_p0 = pnand %p467_p13, %p461_p10 }
  0x20   :  { %471 = shalt.err (!%p468_p0)
}
  0x21   :  { %50 = dma.hbm_to_vmem [thread:$0]  %s592_s4, 2048, %s45_s28, [#allocation6], %s499_s21, %s499_s21, %s500_s22  }
  0x22   :  { %492 = dma.done.wait [#allocation3], 128  }
  0x23   :  { %493 = vsyncadd [#allocation3], 4294967168 }
  0x24   :  { %494 = dma.done.wait [#allocation6], 4096  }
  0x25   :  { %495 = vsyncadd [#allocation6], 4294963200  ;;  %v503_v0 = vmov 0.0   ;;  %vm504_vm0 = vmmov 0   ;;  %v76_v1 = vld [vmem:[#allocation5 + $0x78] sm:$0xff]  ;;  %v75_v2 = vld [vmem:[#allocation5 + $0x70] sm:$0xff]  ;;  %v173_v55 = vlaneseq }
  0x26   :  { %330 = vmatprep.subr.mxu0 %v503_v0  ;;  %362 = vmatprep.mubr.msk.f32.mxu0 %vm504_vm0, %v503_v0  ;;  %v74_v3 = vld [vmem:[#allocation5 + $0x68] sm:$0xff]  ;;  %v73_v4 = vld [vmem:[#allocation5 + $0x60] sm:$0xff]  ;;  %v72_v5 = vld [vmem:[#allocation5 + $0x58] sm:$0xff] }
  0x27   :  { %365 = vmatprep.subr.mxu1 %v503_v0  ;;  %397 = vmatprep.mubr.msk.f32.mxu1 %vm504_vm0, %v503_v0  ;;  %v71_v6 = vld [vmem:[#allocation5 + $0x50] sm:$0xff]  ;;  %v70_v7 = vld [vmem:[#allocation5 + $0x48] sm:$0xff]  ;;  %v69_v8 = vld [vmem:[#allocation5 + $0x40] sm:$0xff]  ;;  %v174_v56 = vshrl.u32 %v173_v55, 7 }
  0x28   :  { %331 = vmatpush3.msra.mxu0 %v76_v1  ;;  %v68_v9 = vld [vmem:[#allocation5 + $0x38] sm:$0xff]  ;;  %v67_v10 = vld [vmem:[#allocation5 + $0x30] sm:$0xff]  ;;  %v66_v11 = vld [vmem:[#allocation5 + $0x28] sm:$0xff] }
  0x29   :  { %332 = vmatprep.subr.mxu0 %v503_v0  ;;  %v65_v12 = vld [vmem:[#allocation5 + $0x20] sm:$0xff]  ;;  %v64_v13 = vld [vmem:[#allocation5 + $0x18] sm:$0xff]  ;;  %v63_v14 = vld [vmem:[#allocation5 + $0x10] sm:$0xff]  ;;  %v175_v58 = vsub.s32 0, %v174_v56 }
  0x2a   :  { %333 = vmatpush3.msra.mxu0 %v75_v2  ;;  %v62_v15 = vld [vmem:[#allocation5 + $0x8] sm:$0xff]  ;;  %v61_v16 = vld [vmem:[#allocation5] sm:$0xff]  ;;  %v60_v17 = vld [vmem:[#allocation2] sm:$0xff] }
  0x2b   :  { %334 = vmatprep.subr.mxu0 %v503_v0  ;;  %v202_v18 = vld [vmem:[#allocation7 + $0x78] sm:$0xff]  ;;  %v201_v19 = vld [vmem:[#allocation7 + $0x70] sm:$0xff]  ;;  %v200_v20 = vld [vmem:[#allocation7 + $0x68] sm:$0xff] }
  0x2c   :  { %335 = vmatpush3.msra.mxu0 %v74_v3  ;;  %366 = vmatpush3.msra.mxu1 %v202_v18  ;;  %v199_v21 = vld [vmem:[#allocation7 + $0x60] sm:$0xff]  ;;  %v198_v22 = vld [vmem:[#allocation7 + $0x58] sm:$0xff]  ;;  %v197_v23 = vld [vmem:[#allocation7 + $0x50] sm:$0xff] }
  0x2d   :  { %336 = vmatprep.subr.mxu0 %v503_v0  ;;  %367 = vmatprep.subr.mxu1 %v503_v0  ;;  %v196_v24 = vld [vmem:[#allocation7 + $0x48] sm:$0xff]  ;;  %v195_v25 = vld [vmem:[#allocation7 + $0x40] sm:$0xff]  ;;  %v194_v26 = vld [vmem:[#allocation7 + $0x38] sm:$0xff] }
  0x2e   :  { %337 = vmatpush3.msra.mxu0 %v73_v4  ;;  %368 = vmatpush3.msra.mxu1 %v201_v19  ;;  %v193_v27 = vld [vmem:[#allocation7 + $0x30] sm:$0xff]  ;;  %v192_v28 = vld [vmem:[#allocation7 + $0x28] sm:$0xff]  ;;  %v191_v29 = vld [vmem:[#allocation7 + $0x20] sm:$0xff] }
  0x2f   :  { %338 = vmatprep.subr.mxu0 %v503_v0  ;;  %369 = vmatprep.subr.mxu1 %v503_v0  ;;  %v190_v30 = vld [vmem:[#allocation7 + $0x18] sm:$0xff]  ;;  %v189_v31 = vld [vmem:[#allocation7 + $0x10] sm:$0xff]  ;;  %v188_v32 = vld [vmem:[#allocation7 + $0x8] sm:$0xff] }
  0x30   :  { %339 = vmatpush3.msra.mxu0 %v72_v5  ;;  %370 = vmatpush3.msra.mxu1 %v200_v20  ;;  %v187_v33 = vld [vmem:[#allocation7] sm:$0xff]  ;;  %v167_v57 = vld [vmem:[%s590_s2] sm:$0x1]  ;;  %s505_s2 = smov [#allocation8]  }
  0x31   :  { %340 = vmatprep.subr.mxu0 %v503_v0  ;;  %371 = vmatprep.subr.mxu1 %v503_v0  ;;  %v169_v61 = vld [vmem:[%s591_s3] sm:$0x1]  ;;  %s286_s11 = sshll.u32 %s505_s2, 4  ;;  %s287_s11 = int_to_ptr.vmem [resolvable:$true] %s286_s11 }
  0x32   :  { %341 = vmatpush3.msra.mxu0 %v71_v6  ;;  %372 = vmatpush3.msra.mxu1 %v199_v21  ;;  %s472_s3 = scalar_lea.vmem %s287_s11, 128  ;;  %p477_p2 = scmp.lt.s32.totalorder %s287_s11, %s287_s11 }
  0x33   :  { %342 = vmatprep.subr.mxu0 %v503_v0  ;;  %373 = vmatprep.subr.mxu1 %v503_v0  ;;  %p473_p1 = scmp.ne.s32.totalorder %s287_s11, %s472_s3  ;;  %p478_p3 = scmp.lt.s32.totalorder %s472_s3, %s472_s3 }
  0x34   :  { %343 = vmatpush3.msra.mxu0 %v70_v7  ;;  %374 = vmatpush3.msra.mxu1 %v198_v22 }
  0x35   :  { %344 = vmatprep.subr.mxu0 %v503_v0  ;;  %375 = vmatprep.subr.mxu1 %v503_v0  ;;  %p479_p4 = por %p478_p3, %p477_p2 }
  0x36   :  { %345 = vmatpush3.msra.mxu0 %v69_v8  ;;  %376 = vmatpush3.msra.mxu1 %v197_v23 }
  0x37   :  { %346 = vmatprep.subr.mxu0 %v503_v0  ;;  %377 = vmatprep.subr.mxu1 %v503_v0  ;;  %p480_p5 = pnand %p479_p4, %p473_p1 }
  0x38   :  { %347 = vmatpush3.msra.mxu0 %v68_v9  ;;  %378 = vmatpush3.msra.mxu1 %v196_v24 }
  0x39   :  { %348 = vmatprep.subr.mxu0 %v503_v0  ;;  %379 = vmatprep.subr.mxu1 %v503_v0 }
  0x3a   :  { %349 = vmatpush3.msra.mxu0 %v67_v10  ;;  %380 = vmatpush3.msra.mxu1 %v195_v25 }
  0x3b   :  { %350 = vmatprep.subr.mxu0 %v503_v0  ;;  %381 = vmatprep.subr.mxu1 %v503_v0 }
  0x3c   :  { %351 = vmatpush3.msra.mxu0 %v66_v11  ;;  %382 = vmatpush3.msra.mxu1 %v194_v26 }
  0x3d   :  { %352 = vmatprep.subr.mxu0 %v503_v0  ;;  %383 = vmatprep.subr.mxu1 %v503_v0 }
  0x3e   :  { %353 = vmatpush3.msra.mxu0 %v65_v12  ;;  %384 = vmatpush3.msra.mxu1 %v193_v27 }
  0x3f   :  { %354 = vmatprep.subr.mxu0 %v503_v0  ;;  %385 = vmatprep.subr.mxu1 %v503_v0 }
  0x40   :  { %355 = vmatpush3.msra.mxu0 %v64_v13  ;;  %386 = vmatpush3.msra.mxu1 %v192_v28 }
  0x41   :  { %356 = vmatprep.subr.mxu0 %v503_v0  ;;  %387 = vmatprep.subr.mxu1 %v503_v0 }
  0x42   :  { %357 = vmatpush3.msra.mxu0 %v63_v14  ;;  %388 = vmatpush3.msra.mxu1 %v191_v29 }
  0x43   :  { %358 = vmatprep.subr.mxu0 %v503_v0  ;;  %389 = vmatprep.subr.mxu1 %v503_v0 }
  0x44   :  { %359 = vmatpush3.msra.mxu0 %v62_v15  ;;  %390 = vmatpush3.msra.mxu1 %v190_v30 }
  0x45   :  { %360 = vmatprep.subr.mxu0 %v503_v0  ;;  %391 = vmatprep.subr.mxu1 %v503_v0 }
  0x46   :  { %361 = vmatpush3.msra.mxu0 %v61_v16  ;;  %392 = vmatpush3.msra.mxu1 %v189_v31 }
  0x47   :  { %363 = vmatmul.mubr.f32.vlgmr.msra.gmra.mxu0 %v60_v17  ;;  %393 = vmatprep.subr.mxu1 %v503_v0 }
  0x48   :  { %394 = vmatpush3.msra.mxu1 %v188_v32 }
  0x49   :  { %395 = vmatprep.subr.mxu1 %v503_v0 }
  0x4a   :  { %396 = vmatpush3.msra.mxu1 %v187_v33 }
 0x107   :  { %v143_v34 = vpop.f32.mrf.mxu0 }
 0x108   :  { %v147_v35 = vrot.slane %v143_v34, 4  ;;  %v153_v36 = vmul.f32 %v143_v34, %v143_v34 }
 0x109   :  { %v364_v37 = vpop.f32.mrf.mxu0 }
 0x10a   :  { %v148_v38 = vadd.f32 %v147_v35, %v143_v34  ;;  %v154_v39 = vrot.slane %v153_v36, 4 }
 0x10c   :  { %v149_v40 = vrot.slane %v148_v38, 2  ;;  %v155_v41 = vadd.f32 %v154_v39, %v153_v36 }
 0x10e   :  { %v150_v42 = vadd.f32 %v149_v40, %v148_v38  ;;  %v156_v43 = vrot.slane %v155_v41, 2 }
 0x110   :  { %v151_v44 = vrot.slane %v150_v42, 1  ;;  %v157_v45 = vadd.f32 %v156_v43, %v155_v41 }
 0x112   :  { %v152_v46 = vadd.f32 %v151_v44, %v150_v42  ;;  %v158_v47 = vrot.slane %v157_v45, 1 }
 0x114   :  { %v159_v48 = vadd.f32 %v158_v47, %v157_v45  ;;  %v160_v49 = vmul.f32 0.125, %v152_v46 }
 0x116   :  { %v161_v50 = vmul.f32 0.125, %v159_v48  ;;  %v162_v51 = vmul.f32 %v160_v49, %v160_v49 }
 0x118   :  { %v163_v52 = vsub.f32 %v161_v50, %v162_v51 }
 0x11a   :  { %v164_v53 = vmax.f32 %v163_v52, 0.0 }
 0x11c   :  { %v165_v54 = vadd.f32 1e-05, %v164_v53 }
 0x11e   :  { %408 = vrsqrt.f32 %v165_v54 }
 0x12b   :  { %v409_v59 = vpop.eup %408 }
 0x12c   :  { %v168_v60 = vmul.f32 %v409_v59, %v167_v57 }
 0x12e   :  { %v176_v62 = vrot.slane %v168_v60, %v175_v58  ;;  %v170_v63 = vmul.f32 %v168_v60, %v160_v49 }
 0x130   :  { %v171_v0 = vsub.f32 %v169_v61, %v170_v63  ;;  %v178_v1 = vmul.f32 %v176_v62, %v143_v34 }
 0x132   :  { %v183_v2 = vrot.slane %v171_v0, %v175_v58 }
 0x134   :  { %v185_v3 = vadd.f32 %v183_v2, %v178_v1 }
 0x136   :  { %v186_v4 = vmax.f32 %v185_v3, 0.0 }
 0x138   :  { %398 = vmatmul.mubr.f32.vlgmr.msra.gmra.mxu1 %v186_v4 }
 0x1f8   :  { %v269_v5 = vpop.f32.mrf.mxu1 }
 0x1f9   :  { %v273_v6 = vmul.f32 %v269_v5, %v269_v5 }
 0x1fa   :  { %v399_v7 = vpop.f32.mrf.mxu1 }
 0x1fb   :  { %274 = vadd.xlane.f32.xlu0 %v273_v6 }
 0x284   :  { %v275_v8 = vpop.xlane.xlu0 %274 }
 0x285   :  { %v276_v9 = vmax.f32 %v275_v8, 1e-24 }
 0x287   :  { %410 = vrsqrt.f32 %v276_v9 }
 0x294   :  { %v411_v10 = vpop.eup %410 }
 0x295   :  { %v278_v11 = vmul.f32 %v411_v10, %v269_v5 }
 0x297   :  { %279 = vst [vmem:[#allocation8] sm:$0xff] %v278_v11 }
 0x298   :  { %483 = shalt.err (!%p480_p5)
}
 0x299   :  { %289 = dma.vmem_to_hbm [thread:$0]  %s287_s11, 128, %s593_s5, [#allocation4]  }
 0x29a   :  { %496 = dma.done.wait [#allocation4], 128  }
 0x29b   :  { %497 = vsyncadd [#allocation4], 4294967168 }
 0x29c   :  { %293 = vsyncpa [#allocation3], 1 }
 0x29d   :  { %294 = vsyncpa [#allocation6], 1 }
 0x29e   :  { %295 = vsyncpa [#allocation4], 1 }

</bundles_post_ra>
